<compile_context>
chip_gen: v6e
topology: v6e:2x2x1
jax: 0.10.0
libtpu: 0.0.40
codegen_flags: <defaults>
</compile_context>

<pallas_src>
import functools

import jax
import jax.numpy as jnp
from jax.experimental import pallas as pl
from jax.experimental.pallas import tpu as pltpu

ALPHA = 0.25
GAMMA = 2.0

_TARGET_BLOCK_BYTES = 2 * 1024 * 1024   # ~2 MiB per input block
_MAX_BLOCK_ROWS = 4096
_LANE_WIDTHS = (512, 256, 128)
_VMEM_LIMIT_BYTES = 32 * 1024 * 1024


def _sublane_multiple(*dtypes) -> int:
    # (8,128) min tile for 32-bit, (16,128) for bf16, (32,128) for int8/bool.
    m = 8
    for d in dtypes:
        m = max(m, 32 // max(jnp.dtype(d).itemsize, 1))
    return m


def _choose_layout(shape, n_elem):
    """Pick a copy-free 2-D view (R, C) of the flattened input."""
    for c in _LANE_WIDTHS:                     # lane-dense, >= 8 rows preferred
        if n_elem % c == 0 and n_elem // c >= 8:
            return n_elem // c, c
    for c in _LANE_WIDTHS:                     # lane-dense, tiny row count
        if n_elem % c == 0:
            return n_elem // c, c
    # TODO(synk): element counts that are not multiples of 128 fall back to the
    # original trailing dim (lane-sparse if it is small; a huge non-aligned
    # trailing dim could exceed the block budget).  Still copy-free + correct.
    if len(shape) >= 2:
        return n_elem // shape[-1], shape[-1]
    return 1, max(n_elem, 1)


def _pick_tile_rows(rows, cols, sub, itemsize):
    if rows < sub:
        return rows                            # single full-dim block
    target = max(sub, min(_TARGET_BLOCK_BYTES // max(cols * itemsize, 1),
                          _MAX_BLOCK_ROWS, rows))
    return (target // sub) * sub


def _focal_loss_tile(x, t, alpha, gamma, approx):
    """Elementwise sigmoid focal loss on one VMEM tile (f32 math)."""
    x = x.astype(jnp.float32)
    t = t.astype(jnp.float32)

    # One shared exp feeds the numerically stable BCE and the sigmoid.
    e = jnp.exp(-jnp.abs(x))                               # EUP
    ce = jnp.maximum(x, 0.0) - x * t + jnp.log1p(e)        # BCE-with-logits
    denom = 1.0 + e
    inv = pl.reciprocal(denom, approx=True) if approx else 1.0 / denom
    p = jnp.where(x >= 0, inv, e * inv)                    # sigmoid(x)

    # q = 1 - p_t = p + t - 2*p*t   (folded: 1 mul + 3 add/sub)
    pt = p * t
    q = (p - pt) + (t - pt)

    g = float(gamma)
    if g == 2.0:
        mod = q * q                                        # VPU mul, no pow
    elif g == int(g) and 0 <= int(g) <= 4:
        mod = jnp.ones_like(q)
        for _ in range(int(g)):
            mod = mod * q
    else:
        mod = q ** g                                       # general (rare)

    loss = ce * mod
    if alpha >= 0:
        # alpha_t = alpha*t + (1-alpha)*(1-t) = (1-alpha) + (2*alpha-1)*t
        loss = ((1.0 - alpha) + (2.0 * alpha - 1.0) * t) * loss
    return loss


def _focal_none_kernel(x_ref, t_ref, out_ref, *, alpha, gamma, approx):
    out_ref[...] = _focal_loss_tile(
        x_ref[...], t_ref[...], alpha, gamma, approx).astype(out_ref.dtype)


def _focal_sum_kernel(x_ref, t_ref, out_ref, *, alpha, gamma, approx,
                      n_inner, grid_rows, tile_rows, rem_rows, fold8, has_dup):
    o = pl.program_id(0)
    j = pl.program_id(1)
    gb = o * n_inner + j          # logical row-block id (overshoots iff has_dup)

    @pl.when(j == 0)
    def _():
        out_ref[...] = jnp.zeros_like(out_ref)

    def compute():
        return _focal_loss_tile(x_ref[...], t_ref[...], alpha, gamma, approx)

    def add(loss):
        if fold8:
            tr, c = loss.shape
            # (tr, C) -> (8, C): rows 8 apart share lanes -> pure per-vreg adds.
            out_ref[...] += jnp.sum(loss.reshape(tr // 8, 8, c), axis=0)
        else:
            out_ref[...] += loss

    if rem_rows < tile_rows:
        # Hot path: every block except the last is full -> no masking.
        @pl.when(gb < grid_rows - 1)
        def _():
            add(compute())

        # Last logical block: zero the rows that lie past the end of the array.
        @pl.when(gb == grid_rows - 1)
        def _():
            loss = compute()
            rid = jax.lax.broadcasted_iota(jnp.int32, loss.shape, 0)
            add(jnp.where(rid < rem_rows, loss, 0.0))
        # Clamped duplicate blocks (gb >= grid_rows) match neither -> skipped.
    elif has_dup:
        @pl.when(gb < grid_rows)
        def _():
            add(compute())
    else:
        add(compute())


def sigmoid_focal_loss(inputs, targets, alpha=ALPHA, gamma=GAMMA,
                       reduction="mean", approx_reciprocal=False):
    if reduction not in ("none", "mean", "sum"):
        raise ValueError(f"unknown reduction: {reduction}")

    orig_shape = inputs.shape
    n_elem = int(inputs.size)
    out_dtype = (inputs.dtype if jnp.issubdtype(inputs.dtype, jnp.floating)
                 else jnp.float32)

    if n_elem == 0:
        if reduction == "none":
            return jnp.zeros(orig_shape, dtype=out_dtype)
        total = jnp.float32(0.0)
        return total / jnp.float32(0.0) if reduction == "mean" else total

    rows, cols = _choose_layout(orig_shape, n_elem)
    in_itemsize = max(jnp.dtype(inputs.dtype).itemsize,
                      jnp.dtype(targets.dtype).itemsize)
    sub = _sublane_multiple(inputs.dtype, targets.dtype,
                            out_dtype if reduction == "none" else jnp.float32)
    tile_rows = _pick_tile_rows(rows, cols, sub, in_itemsize)
    grid_rows = pl.cdiv(rows, tile_rows)
    rem_rows = rows - (grid_rows - 1) * tile_rows

    # rows * cols == n_elem exactly: reshape is metadata-only (no pad / slice).
    x2d = inputs.reshape(rows, cols)
    t2d = targets.reshape(rows, cols)

    in_bytes = (x2d.size * x2d.dtype.itemsize + t2d.size * t2d.dtype.itemsize)

    if reduction == "none":
        kernel = functools.partial(_focal_none_kernel, alpha=alpha, gamma=gamma,
                                   approx=approx_reciprocal)
        out = pl.pallas_call(
            kernel,
            out_shape=jax.ShapeDtypeStruct((rows, cols), out_dtype),
            grid=(grid_rows,),
            in_specs=[pl.BlockSpec((tile_rows, cols), lambda i: (i, 0)),
                      pl.BlockSpec((tile_rows, cols), lambda i: (i, 0))],
            out_specs=pl.BlockSpec((tile_rows, cols), lambda i: (i, 0)),
            compiler_params=pltpu.CompilerParams(
                dimension_semantics=("parallel",),
                vmem_limit_bytes=_VMEM_LIMIT_BYTES),
            cost_estimate=pl.CostEstimate(
                flops=25 * n_elem, transcendentals=2 * n_elem,
                bytes_accessed=in_bytes + n_elem * jnp.dtype(out_dtype).itemsize),
        )(x2d, t2d)
        return out.reshape(orig_shape)

    # --- sum / mean ---
    fold8 = (tile_rows % 8 == 0)
    out_rows = 8 if fold8 else tile_rows
    n_outer = 2 if grid_rows >= 2 else 1       # guaranteed 2-way split on v7x
    n_inner = pl.cdiv(grid_rows, n_outer)
    has_dup = n_outer * n_inner > grid_rows    # odd block count -> one duplicate

    if has_dup:
        def in_idx(o, j):
            return (jnp.minimum(o * n_inner + j, grid_rows - 1), 0)
    else:
        def in_idx(o, j):
            return (o * n_inner + j, 0)

    kernel = functools.partial(
        _focal_sum_kernel, alpha=alpha, gamma=gamma, approx=approx_reciprocal,
        n_inner=n_inner, grid_rows=grid_rows, tile_rows=tile_rows,
        rem_rows=rem_rows, fold8=fold8, has_dup=has_dup)

    partials = pl.pallas_call(
        kernel,
        out_shape=jax.ShapeDtypeStruct((n_outer * out_rows, cols), jnp.float32),
        grid=(n_outer, n_inner),
        in_specs=[pl.BlockSpec((tile_rows, cols), in_idx),
                  pl.BlockSpec((tile_rows, cols), in_idx)],
        out_specs=pl.BlockSpec((out_rows, cols), lambda o, j: (o, 0)),
        compiler_params=pltpu.CompilerParams(
            dimension_semantics=("parallel", "arbitrary"),
            vmem_limit_bytes=_VMEM_LIMIT_BYTES),
        cost_estimate=pl.CostEstimate(
            flops=26 * n_elem, transcendentals=2 * n_elem,
            bytes_accessed=in_bytes + n_outer * out_rows * cols * 4),
    )(x2d, t2d)

    total = jnp.sum(partials)                  # tiny final reduce in JAX
    if reduction == "mean":
        return total / jnp.float32(n_elem)
    return total


class SigmoidFocalLoss:
    """Focal loss with binary cross entropy taking logits as inputs."""

    def __init__(self, alpha: float = 0.25, gamma: float = 2.0, reduction: str = "mean"):
        self.alpha = alpha
        self.gamma = gamma
        self.reduction = reduction

    def __call__(self, inputs, targets):
        return sigmoid_focal_loss(inputs, targets, alpha=self.alpha,
                                  gamma=self.gamma, reduction=self.reduction)


def _reference(inputs, targets, alpha=ALPHA, gamma=GAMMA, reduction="mean"):
    x = inputs.astype(jnp.float32)
    t = targets.astype(jnp.float32)
    ce = jnp.maximum(x, 0.0) - x * t + jnp.log1p(jnp.exp(-jnp.abs(x)))
    p = jax.nn.sigmoid(x)
    p_t = p * t + (1.0 - p) * (1.0 - t)
    loss = ce * (1.0 - p_t) ** gamma
    if alpha >= 0:
        loss = (alpha * t + (1.0 - alpha) * (1.0 - t)) * loss
    if reduction == "mean":
        return loss.mean()
    elif reduction == "sum":
        return loss.sum()
    return loss


if __name__ == "__main__":
    key = jax.random.PRNGKey(0)
    k1, k2, k3 = jax.random.split(key, 3)

    # NCHW logits / binary targets.
    B, C, H, W = 2, 4, 16, 16
    logits = jax.random.normal(k1, (B, C, H, W), dtype=jnp.float32) * 3.0
    targets = (jax.random.uniform(k2, (B, C, H, W)) > 0.5).astype(jnp.float32)

    # mean (default module behaviour)
    loss_mod = SigmoidFocalLoss(alpha=0.25, gamma=2.0, reduction="mean")
    out_mean = jax.block_until_ready(loss_mod(logits, targets))
    ref_mean = _reference(logits, targets, reduction="mean")
    assert jnp.allclose(out_mean, ref_mean, rtol=1e-5, atol=1e-6), (out_mean, ref_mean)

    # sum
    out_sum = jax.block_until_ready(sigmoid_focal_loss(logits, targets, reduction="sum"))
    ref_sum = _reference(logits, targets, reduction="sum")
    assert jnp.allclose(out_sum, ref_sum, rtol=1e-5, atol=1e-5), (out_sum, ref_sum)

    # none (elementwise, dtype-preserving, no post-kernel slice)
    out_none = jax.block_until_ready(sigmoid_focal_loss(logits, targets, reduction="none"))
    ref_none = _reference(logits, targets, reduction="none")
    assert out_none.shape == ref_none.shape and out_none.dtype == logits.dtype
    assert jnp.allclose(out_none, ref_none, rtol=1e-5, atol=1e-6)

    # Ragged element count (not a multiple of 128): exercises the masked last
    # block and the 2-way grid split, with no host-side padding at all.
    r_logits = jax.random.normal(k3, (3, 5, 37), dtype=jnp.float32) * 2.0
    r_targets = (jax.random.uniform(k2, (3, 5, 37)) > 0.5).astype(jnp.float32)
    out_r = jax.block_until_ready(sigmoid_focal_loss(r_logits, r_targets, reduction="mean"))
    ref_r = _reference(r_logits, r_targets, reduction="mean")
    assert jnp.allclose(out_r, ref_r, rtol=1e-5, atol=1e-6), (out_r, ref_r)
    out_rn = jax.block_until_ready(sigmoid_focal_loss(r_logits, r_targets, reduction="none"))
    assert jnp.allclose(out_rn, _reference(r_logits, r_targets, reduction="none"),
                        rtol=1e-5, atol=1e-6)

    # bf16 inputs: f32 math inside, bf16 elementwise output (halved writeback).
    bf_logits = logits.astype(jnp.bfloat16)
    out_bf = jax.block_until_ready(sigmoid_focal_loss(bf_logits, targets, reduction="none"))
    assert out_bf.dtype == jnp.bfloat16
    ref_bf = _reference(bf_logits, targets, reduction="none")
    assert jnp.allclose(out_bf.astype(jnp.float32), ref_bf, rtol=2e-2, atol=2e-2)

    print("KERNEL_OK")
</pallas_src>

<mosaic_0001>
module attributes {stable_mosaic.version = 11 : i64} {
  func.func @_focal_sum_kernel(%arg0: i32, %arg1: i32, %arg2: memref<8x256xf32, #tpu.memory_space<vmem>>, %arg3: memref<8x256xf32, #tpu.memory_space<vmem>>, %arg4: memref<8x256xf32, #tpu.memory_space<vmem>>) attributes {dimension_semantics = [#tpu.dimension_semantics<parallel>, #tpu.dimension_semantics<arbitrary>], iteration_bounds = array<i64: 1, 1>, scalar_prefetch = 0 : i64, scratch_operands = 0 : i64, tpu.core_type = #tpu.core_type<tc>, window_params = [{transform_indices = @transform_0, window_bounds = array<i64: 8, 256>}, {transform_indices = @transform_1, window_bounds = array<i64: 8, 256>}, {transform_indices = @transform_2, window_bounds = array<i64: 8, 256>}]} {
    %c0_i32 = arith.constant 0 : i32
    %0 = arith.cmpi eq, %arg1, %c0_i32 : i32
    %1 = arith.extui %0 : i1 to i32
    %c0_i32_0 = arith.constant 0 : i32
    %2 = arith.cmpi ne, %1, %c0_i32_0 : i32
    scf.if %2 {
      %cst_15 = arith.constant 0.000000e+00 : f32
      %39 = vector.broadcast %cst_15 : f32 to vector<8x256xf32>
      %c0_16 = arith.constant 0 : index
      %c0_17 = arith.constant 0 : index
      %40 = vector.load %arg4[%c0_16, %c0_17] : memref<8x256xf32, #tpu.memory_space<vmem>>, vector<8x256xf32>
      tpu.vector_store %arg4[%c0_16, %c0_17], %39 {strides = array<i32>} : memref<8x256xf32, #tpu.memory_space<vmem>>, vector<8x256xf32>,
    } else {
    }
    %c0 = arith.constant 0 : index
    %c0_1 = arith.constant 0 : index
    %3 = vector.load %arg2[%c0, %c0_1] : memref<8x256xf32, #tpu.memory_space<vmem>>, vector<8x256xf32>
    %c0_2 = arith.constant 0 : index
    %c0_3 = arith.constant 0 : index
    %4 = vector.load %arg3[%c0_2, %c0_3] : memref<8x256xf32, #tpu.memory_space<vmem>>, vector<8x256xf32>
    %5 = math.absf %3 : vector<8x256xf32>
    %cst = arith.constant 0.000000e+00 : f32
    %6 = vector.broadcast %cst : f32 to vector<8x256xf32>
    %7 = arith.subf %6, %5 : vector<8x256xf32>
    %8 = math.exp %7 : vector<8x256xf32>
    %cst_4 = arith.constant 0.000000e+00 : f32
    %9 = vector.broadcast %cst_4 : f32 to vector<8x256xf32>
    %10 = arith.maximumf %3, %9 : vector<8x256xf32>
    %11 = arith.mulf %3, %4 : vector<8x256xf32>
    %12 = arith.subf %10, %11 : vector<8x256xf32>
    %13 = math.log1p %8 : vector<8x256xf32>
    %14 = arith.addf %12, %13 : vector<8x256xf32>
    %cst_5 = arith.constant 1.000000e+00 : f32
    %15 = vector.broadcast %cst_5 : f32 to vector<8x256xf32>
    %16 = arith.addf %15, %8 : vector<8x256xf32>
    %cst_6 = arith.constant 1.000000e+00 : f32
    %17 = vector.broadcast %cst_6 : f32 to vector<8x256xf32>
    %18 = arith.divf %17, %16 : vector<8x256xf32>
    %cst_7 = arith.constant 0.000000e+00 : f32
    %19 = vector.broadcast %cst_7 : f32 to vector<8x256xf32>
    %20 = arith.cmpf oge, %3, %19 : vector<8x256xf32>
    %21 = arith.mulf %8, %18 : vector<8x256xf32>
    %22 = arith.select %20, %18, %21 : vector<8x256xi1>, vector<8x256xf32>
    %23 = arith.mulf %22, %4 : vector<8x256xf32>
    %24 = arith.subf %22, %23 : vector<8x256xf32>
    %25 = arith.subf %4, %23 : vector<8x256xf32>
    %26 = arith.addf %24, %25 : vector<8x256xf32>
    %27 = arith.mulf %26, %26 : vector<8x256xf32>
    %28 = arith.mulf %14, %27 : vector<8x256xf32>
    %cst_8 = arith.constant -5.000000e-01 : f32
    %29 = vector.broadcast %cst_8 : f32 to vector<8x256xf32>
    %30 = arith.mulf %29, %4 : vector<8x256xf32>
    %cst_9 = arith.constant 7.500000e-01 : f32
    %31 = vector.broadcast %cst_9 : f32 to vector<8x256xf32>
    %32 = arith.addf %31, %30 : vector<8x256xf32>
    %33 = arith.mulf %32, %28 : vector<8x256xf32>
    %c0_10 = arith.constant 0 : index
    %c0_11 = arith.constant 0 : index
    %34 = vector.load %arg4[%c0_10, %c0_11] : memref<8x256xf32, #tpu.memory_space<vmem>>, vector<8x256xf32>
    %35 = vector.shape_cast %33 : vector<8x256xf32> to vector<1x8x256xf32>
    %cst_12 = arith.constant dense<0.000000e+00> : vector<8x256xf32>
    %36 = vector.multi_reduction <add>, %35, %cst_12 [0] : vector<1x8x256xf32> to vector<8x256xf32>
    %37 = arith.addf %34, %36 : vector<8x256xf32>
    %c0_13 = arith.constant 0 : index
    %c0_14 = arith.constant 0 : index
    %38 = vector.load %arg4[%c0_13, %c0_14] : memref<8x256xf32, #tpu.memory_space<vmem>>, vector<8x256xf32>
    tpu.vector_store %arg4[%c0_13, %c0_14], %37 {strides = array<i32>} : memref<8x256xf32, #tpu.memory_space<vmem>>, vector<8x256xf32>,
    return
  }
  func.func @transform_0(%arg0: i32, %arg1: i32) -> (i32, i32) {
    %c1_i32 = arith.constant 1 : i32
    %0 = arith.muli %arg0, %c1_i32 : i32
    %1 = arith.addi %0, %arg1 : i32
    %c0_i32 = arith.constant 0 : i32
    %c0_i32_0 = arith.constant 0 : i32
    return %1, %c0_i32 : i32, i32
  }
  func.func @transform_1(%arg0: i32, %arg1: i32) -> (i32, i32) {
    %c1_i32 = arith.constant 1 : i32
    %0 = arith.muli %arg0, %c1_i32 : i32
    %1 = arith.addi %0, %arg1 : i32
    %c0_i32 = arith.constant 0 : i32
    %c0_i32_0 = arith.constant 0 : i32
    return %1, %c0_i32 : i32, i32
  }
  func.func @transform_2(%arg0: i32, %arg1: i32) -> (i32, i32) {
    %c0_i32 = arith.constant 0 : i32
    %c0_i32_0 = arith.constant 0 : i32
    return %arg0, %c0_i32 : i32, i32
  }
}

</mosaic_0001>

<bundles_post_ra>
// kernel: tpu_custom_call.1
= control target key start
LH: loop header
LB: loop body
LE: loop exit
PB: predicated region body
PF: predicated region fallthrough
CT: control target
= control target key end

     0   :  { %7 = vsyncpa [#allocation3], 0  ;;  %s265_s0 = inlined_call_operand.hbm [shape: f32[8,256], index: 0, kind: input, shape index: {}]   ;;  %s266_s1 = inlined_call_operand.hbm [shape: f32[8,256], index: 1, kind: input, shape index: {}]   ;;  %s267_s2 = inlined_call_operand.hbm [shape: f32[8,256], index: 2, kind: output, shape index: {}]  }
   0x1   :  { %8 = vsyncpa [#allocation6], 0 }
   0x2   :  { %9 = vsyncpa [#allocation4], 0  ;;  %s226_s9 = smov [#allocation2]   ;;  %s227_s11 = smov [#allocation5]  }
   0x3   :  { %s20_s10 = sshll.u32 %s226_s9, 4  ;;  %s34_s12 = sshll.u32 %s227_s11, 4  ;;  %s21_s10 = int_to_ptr.vmem [resolvable:$true] %s20_s10  ;;  %s35_s12 = int_to_ptr.vmem [resolvable:$true] %s34_s12 }
   0x4   :  { %s168_s13 = scalar_lea.vmem %s21_s10, 256  ;;  %p173_p1 = scmp.lt.s32.totalorder %s21_s10, %s21_s10 }
   0x5   :  { %p169_p0 = scmp.ne.s32.totalorder %s21_s10, %s168_s13  ;;  %p174_p2 = scmp.lt.s32.totalorder %s168_s13, %s168_s13 }
   0x7   :  { %p175_p3 = por %p174_p2, %p173_p1 }
   0x9   :  { %p176_p4 = pnand %p175_p3, %p169_p0 }
   0xb   :  { %179 = shalt.err (!%p176_p4)
}
   0xc   :  { %23 = dma.hbm_to_vmem [thread:$0]  %s265_s0, 256, %s21_s10, [#allocation3]  }
   0xd   :  { %s188_s16 = scalar_lea.vmem %s35_s12, 256  ;;  %p193_p6 = scmp.lt.s32.totalorder %s35_s12, %s35_s12 }
   0xe   :  { %p189_p5 = scmp.ne.s32.totalorder %s35_s12, %s188_s16  ;;  %p194_p7 = scmp.lt.s32.totalorder %s188_s16, %s188_s16 }
  0x10   :  { %p195_p8 = por %p194_p7, %p193_p6 }
  0x12   :  { %p196_p9 = pnand %p195_p8, %p189_p5 }
  0x14   :  { %199 = shalt.err (!%p196_p9)
}
  0x15   :  { %37 = dma.hbm_to_vmem [thread:$0]  %s266_s1, 256, %s35_s12, [#allocation6]  }
  0x16   :  { %220 = dma.done.wait [#allocation3], 256  }
  0x17   :  { %221 = vsyncadd [#allocation3], 4294967040 }
  0x18   :  { %222 = dma.done.wait [#allocation6], 256  }
  0x19   :  { %223 = vsyncadd [#allocation6], 4294967040  ;;  %v52_v0 = vld [vmem:[#allocation2] sm:$0xff]  ;;  %v53_v1 = vld [vmem:[#allocation2 + $0x8] sm:$0xff]  ;;  %s228_s0 = smov [#allocation7]  }
  0x1a   :  { %v56_v2 = vand.u32 2147483647, %v52_v0  ;;  %v57_v3 = vand.u32 2147483647, %v53_v1  ;;  %v54_v17 = vld [vmem:[#allocation5] sm:$0xff]  ;;  %v64_v20 = vmax.f32 %v52_v0, 0.0 }
  0x1b   :  { %v66_v21 = vmul.f32 %v54_v17, %v52_v0  ;;  %vm96_vm0 = vcmp.ge.f32.partialorder %v52_v0, 0.0  ;;  %v55_v27 = vld [vmem:[#allocation5 + $0x8] sm:$0xff]  ;;  %v65_v30 = vmax.f32 %v53_v1, 0.0  ;;  %vm97_vm2 = vcmp.ge.f32.partialorder %v53_v1, 0.0  ;;  %s134_s1 = sshll.u32 %s228_s0, 4  ;;  %s135_s1 = int_to_ptr.vmem [resolvable:$true] %s134_s1 }
  0x1c   :  { %v58_v4 = vsub.f32 0.0, %v56_v2  ;;  %v59_v5 = vsub.f32 0.0, %v57_v3  ;;  %v67_v31 = vmul.f32 %v55_v27, %v53_v1  ;;  %v114_v40 = vmul.f32 -0.5, %v54_v17  ;;  %s200_s19 = scalar_lea.vmem %s135_s1, 256  ;;  %p205_p11 = scmp.lt.s32.totalorder %s135_s1, %s135_s1 }
  0x1d   :  { %v68_v36 = vsub.f32 %v64_v20, %v66_v21  ;;  %v115_v47 = vmul.f32 -0.5, %v55_v27  ;;  %p201_p10 = scmp.ne.s32.totalorder %s135_s1, %s200_s19  ;;  %p206_p12 = scmp.lt.s32.totalorder %s200_s19, %s200_s19 }
  0x1e   :  { %v60_v6 = vmul.f32 1.442695, %v58_v4  ;;  %v62_v7 = vmul.f32 1.442695, %v59_v5  ;;  %v69_v44 = vsub.f32 %v65_v30, %v67_v31  ;;  %v116_v53 = vadd.f32 0.75, %v114_v40 }
  0x1f   :  { %v117_v58 = vadd.f32 0.75, %v115_v47  ;;  %p207_p13 = por %p206_p12, %p205_p11 }
  0x20   :  { %148 = vpow2.f32 %v60_v6 }
  0x21   :  { %150 = vpow2.f32 %v62_v7  ;;  %p208_p0 = pnand %p207_p13, %p201_p10 }
  0x2d   :  { %v149_v8 = vpop.eup %148 }
  0x2e   :  { %v151_v9 = vpop.eup %150  ;;  %v70_v10 = vadd.f32 1.0, %v149_v8  ;;  %v73_v12 = vmul.f32 -0.5, %v149_v8  ;;  %v76_v15 = vand.u32 2147483647, %v149_v8 }
  0x2f   :  { %v79_v11 = vadd.f32 1.0, %v151_v9  ;;  %v82_v13 = vmul.f32 -0.5, %v151_v9  ;;  %v85_v22 = vand.u32 2147483647, %v151_v9 }
  0x30   :  { %152 = vlog2.f32 %v70_v10  ;;  %v74_v14 = vadd.f32 1.0, %v73_v12  ;;  %vm250_vm1 = vcmp.lt.f32.partialorder %v76_v15, 0.0004427343 }
  0x31   :  { %154 = vrcp.f32 %v70_v10  ;;  %v83_v18 = vadd.f32 1.0, %v82_v13  ;;  %vm254_vm3 = vcmp.lt.f32.partialorder %v85_v22, 0.0004427343 }
  0x32   :  { %156 = vlog2.f32 %v79_v11  ;;  %v75_v25 = vmul.f32 %v149_v8, %v74_v14 }
  0x33   :  { %158 = vrcp.f32 %v79_v11  ;;  %v84_v34 = vmul.f32 %v151_v9, %v83_v18 }
  0x3d   :  { %v153_v16 = vpop.eup %152 }
  0x3e   :  { %v155_v19 = vpop.eup %154  ;;  %v72_v24 = vmul.f32 0.6931472, %v153_v16 }
  0x3f   :  { %v157_v23 = vpop.eup %156  ;;  %v98_v26 = vmul.f32 %v155_v19, %v149_v8 }
  0x40   :  { %v159_v28 = vpop.eup %158  ;;  %v81_v33 = vmul.f32 0.6931472, %v157_v23  ;;  %v78_v39 = vsel %vm250_vm1, %v75_v25, %v72_v24 }
  0x41   :  { %v100_v32 = vsel %vm96_vm0, %v155_v19, %v98_v26  ;;  %v99_v35 = vmul.f32 %v159_v28, %v151_v9  ;;  %v88_v48 = vadd.f32 %v78_v39, %v68_v36 }
  0x42   :  { %v102_v37 = vmul.f32 %v100_v32, %v54_v17  ;;  %v87_v46 = vsel %vm254_vm3, %v84_v34, %v81_v33 }
  0x43   :  { %v101_v41 = vsel %vm97_vm2, %v159_v28, %v99_v35  ;;  %v89_v54 = vadd.f32 %v87_v46, %v69_v44 }
  0x44   :  { %v104_v42 = vsub.f32 %v100_v32, %v102_v37  ;;  %v106_v43 = vsub.f32 %v54_v17, %v102_v37  ;;  %v103_v45 = vmul.f32 %v101_v41, %v55_v27 }
  0x46   :  { %v108_v49 = vadd.f32 %v106_v43, %v104_v42  ;;  %v105_v50 = vsub.f32 %v101_v41, %v103_v45  ;;  %v107_v51 = vsub.f32 %v55_v27, %v103_v45 }
  0x48   :  { %v110_v52 = vmul.f32 %v108_v49, %v108_v49  ;;  %v109_v55 = vadd.f32 %v107_v51, %v105_v50 }
  0x4a   :  { %v112_v56 = vmul.f32 %v110_v52, %v88_v48  ;;  %v111_v57 = vmul.f32 %v109_v55, %v109_v55 }
  0x4c   :  { %v118_v59 = vmul.f32 %v116_v53, %v112_v56  ;;  %v113_v60 = vmul.f32 %v111_v57, %v89_v54 }
  0x4e   :  { %v119_v61 = vmul.f32 %v117_v58, %v113_v60  ;;  %126 = vst [vmem:[#allocation7] sm:$0xff] %v118_v59 }
  0x50   :  { %127 = vst [vmem:[#allocation7 + $0x8] sm:$0xff] %v119_v61 }
  0x51   :  { %211 = shalt.err (!%p208_p0)
}
  0x52   :  { %137 = dma.vmem_to_hbm [thread:$0]  %s135_s1, 256, %s267_s2, [#allocation4]  }
  0x53   :  { %224 = dma.done.wait [#allocation4], 256  }
  0x54   :  { %225 = vsyncadd [#allocation4], 4294967040 }
  0x55   :  { %141 = vsyncpa [#allocation3], 1 }
  0x56   :  { %142 = vsyncpa [#allocation6], 1 }
  0x57   :  { %143 = vsyncpa [#allocation4], 1 }

</bundles_post_ra>
